<compile_context>
chip_gen: v5e
topology: v5e:2x2
jax: 0.10.0
libtpu: 0.0.40
codegen_flags: <defaults>
</compile_context>

<pallas_src>
import jax
import jax.numpy as jnp
from jax import lax
from jax.experimental import pallas as pl
from jax.experimental.pallas import tpu as pltpu


def _celu(x):
    # CELU with alpha=1.0: max(0, x) + min(0, exp(x) - 1), computed in f32.
    return jnp.where(x > 0, x, jnp.exp(jnp.minimum(x, 0.0)) - 1.0)


_PAD = 8  # sublane-aligned offset of the real data inside the padded scratch


# -------------------- fused trunk: 1x1 conv + all resblocks -----------------
def _trunk_kernel(x_ref, w0_ref, b0_ref, wres_ref, bres_ref, y_ref, pad_ref):
    # x_ref   : (1, L, Cin)        bf16 channels-last input (this batch)
    # w0_ref  : (Cin, H)           bf16 1x1 conv weight;  b0_ref: (1, H) f32
    # wres_ref: (2*NRES, 5*H, H)   bf16 im2col-flattened k=5 weights (BN folded)
    # bres_ref: (2*NRES, 1, H)     f32 folded biases
    # y_ref   : (1, H, L)          bf16 trunk output, NCL layout (lanes = L)
    # pad_ref : VMEM (L+16, H) f32 scratch; rows [_PAD, _PAD+L) carry data,
    #           halo rows stay zero => implicit 'same' padding.
    L = x_ref.shape[1]
    H = w0_ref.shape[1]
    n_res = wres_ref.shape[0] // 2

    # Zero only the two 8-row halo slabs (data rows are fully overwritten).
    pad_ref[pl.ds(0, _PAD), :] = jnp.zeros((_PAD, H), jnp.float32)
    pad_ref[pl.ds(_PAD + L, _PAD), :] = jnp.zeros((_PAD, H), jnp.float32)

    def conv5(a, w_flat, bias, extra):
        # 'same' conv, k=5, as one im2col matmul:
        #   out[l] = bias + extra[l] + [a[l-2]|a[l-1]|a[l]|a[l+1]|a[l+2]] @ w_flat
        # a: (L, H) f32; w_flat: (5H, H) bf16; bias: (1, H) f32; extra: (L,H)/0.
        pad_ref[pl.ds(_PAD, L), :] = a
        im2col = jnp.concatenate(
            [pad_ref[pl.ds(_PAD - 2 + t, L), :] for t in range(5)], axis=-1)
        out = jnp.dot(im2col.astype(jnp.bfloat16), w_flat,
                      preferred_element_type=jnp.float32)
        return out + bias + extra

    # 1x1 conv + CELU (operands bf16, accumulate/elementwise f32).
    y = _celu(jnp.dot(x_ref[0], w0_ref[...],
                      preferred_element_type=jnp.float32) + b0_ref[...])

    def resblock(j, y):
        h = _celu(conv5(y, wres_ref[2 * j], bres_ref[2 * j], 0.0))
        # Dropout(p=0.3): inference no-op.
        return _celu(conv5(h, wres_ref[2 * j + 1], bres_ref[2 * j + 1], y))

    # fori_loop bounds live ranges for realistic resblock counts; fully
    # unrolled (static indices) when the count is small.
    y = lax.fori_loop(0, n_res, resblock, y, unroll=(n_res <= 4))

    # Emit bf16, NCL layout: lane axis is L (lane-dense for realistic seq_len).
    y_ref[0] = jnp.transpose(y).astype(y_ref.dtype)


def trunk_forward(x_nlc, w0, b0, res_w, res_b):
    B, L, Cin = x_nlc.shape
    H = w0.shape[1]
    n_conv = res_w.shape[0]
    # TODO(synk): for very long sequences on v7x, additionally tile over L with
    # an in-kernel halo instead of keeping the whole (L, H) activation resident.
    return pl.pallas_call(
        _trunk_kernel,
        out_shape=jax.ShapeDtypeStruct((B, H, L), jnp.bfloat16),
        grid=(B,),
        in_specs=[
            pl.BlockSpec((1, L, Cin), lambda b: (b, 0, 0)),
            pl.BlockSpec((Cin, H), lambda b: (0, 0)),
            pl.BlockSpec((1, H), lambda b: (0, 0)),
            pl.BlockSpec((n_conv, 5 * H, H), lambda b: (0, 0, 0)),
            pl.BlockSpec((n_conv, 1, H), lambda b: (0, 0, 0)),
        ],
        out_specs=pl.BlockSpec((1, H, L), lambda b: (b, 0, 0)),
        scratch_shapes=[pltpu.VMEM((L + 2 * _PAD, H), jnp.float32)],
        compiler_params=pltpu.CompilerParams(
            dimension_semantics=("parallel",),
            vmem_limit_bytes=48 * 1024 * 1024),
    )(x_nlc, w0, b0, res_w, res_b)


# ------ final Conv1d(H, E, k=L) == dense over D = H*L, transposed K-tiled ----
def _dense_kernel(wT_ref, xT_ref, b_ref, o_ref, acc_ref):
    # out^T (E, B) = sum_k  W (E, tk) @ y^T (tk, B)   (+ bias at the end)
    k = pl.program_id(0)

    @pl.when(k == 0)
    def _init():
        acc_ref[...] = jnp.zeros_like(acc_ref)

    acc_ref[...] += jnp.dot(wT_ref[...], xT_ref[...],
                            preferred_element_type=jnp.float32)

    @pl.when(k == pl.num_programs(0) - 1)
    def _finalize():
        o_ref[...] = (acc_ref[...] + b_ref[...]).astype(o_ref.dtype)


def dense_transposed_ktiled(wT, xT, b, *, tk=1024):
    # wT: (E, D) bf16, xT: (D, B) bf16, b: (E, 1) f32  ->  (E, B) f32
    # The (E, tk) weight tile streamed from HBM is lane-dense along K (tk>=128)
    # regardless of E, so the purely weight-stream-bound dense runs at the HBM
    # roofline. tk=1024 suits v5e/v6e (128 MiB VMEM) and v7x (64 MiB).
    E, D = wT.shape
    B = xT.shape[1]
    tk = min(tk, D)
    nk = pl.cdiv(D, tk)
    d_pad = nk * tk
    if d_pad != D:
        # TODO(synk): store the weight pre-padded so this pad isn't re-done per call.
        wT = jnp.pad(wT, ((0, 0), (0, d_pad - D)))
        xT = jnp.pad(xT, ((0, d_pad - D), (0, 0)))
    return pl.pallas_call(
        _dense_kernel,
        out_shape=jax.ShapeDtypeStruct((E, B), jnp.float32),
        grid=(nk,),
        in_specs=[
            pl.BlockSpec((E, tk), lambda k: (0, k)),
            pl.BlockSpec((tk, B), lambda k: (k, 0)),
            pl.BlockSpec((E, 1), lambda k: (0, 0)),
        ],
        out_specs=pl.BlockSpec((E, B), lambda k: (0, 0)),
        scratch_shapes=[pltpu.VMEM((E, B), jnp.float32)],
        compiler_params=pltpu.CompilerParams(
            dimension_semantics=("arbitrary",),
            vmem_limit_bytes=48 * 1024 * 1024),
    )(wT, xT, b)


# ----------------------------- parameter setup ------------------------------
def _fold_bn(w_ocK, b_o, gamma, beta, mean, var, eps=1e-5):
    """Fold eval-mode BatchNorm1d into a Conv1d (PyTorch weight layout)."""
    scale = gamma / jnp.sqrt(var + eps)
    w = w_ocK * scale[:, None, None]
    b = (b_o - mean) * scale + beta
    return w, b


def init_params(key, cin, h, emb, seq_len, n_res):
    ks = jax.random.split(key, 4 + n_res)
    p = {}
    # conv: nn.Conv1d(4, H, 1) -> PyTorch weight (H, 4, 1), bias (H,)
    w0 = jax.random.normal(ks[0], (h, cin, 1), jnp.float32) * 0.1
    b0 = jax.random.normal(ks[1], (h,), jnp.float32) * 0.1
    p["conv_w"] = jnp.transpose(w0[:, :, 0]).astype(jnp.bfloat16)   # (Cin, H)
    p["conv_b"] = b0.reshape(1, h)                                  # f32

    # resblocks: Conv1d(H,H,5,pad=2) + BN(H) twice; BN at fresh-init defaults.
    res_w, res_b = [], []
    for i in range(n_res):
        k1, k2 = jax.random.split(ks[2 + i], 2)
        for kk in (k1, k2):
            ka, kb = jax.random.split(kk, 2)
            w = jax.random.normal(ka, (h, h, 5), jnp.float32) * 0.05
            b = jax.random.normal(kb, (h,), jnp.float32) * 0.05
            gamma = jnp.ones((h,), jnp.float32)
            beta = jnp.zeros((h,), jnp.float32)
            mean = jnp.zeros((h,), jnp.float32)
            var = jnp.ones((h,), jnp.float32)
            wf, bf = _fold_bn(w, b, gamma, beta, mean, var)
            # (O, C, 5) -> (5, C, O) -> flatten tap-major to (5*C, O) = im2col order
            res_w.append(jnp.transpose(wf, (2, 1, 0)).reshape(5 * h, h)
                         .astype(jnp.bfloat16))
            res_b.append(bf.reshape(1, h))
    p["res_w"] = jnp.stack(res_w, axis=0)        # (2*n_res, 5*H, H) bf16
    p["res_b"] = jnp.stack(res_b, axis=0)        # (2*n_res, 1, H)   f32

    # linear: nn.Conv1d(H, E, seq_len) -> weight (E, H, L), bias (E,)
    wl = jax.random.normal(ks[2 + n_res], (emb, h, seq_len), jnp.float32) * 0.02
    bl = jax.random.normal(ks[3 + n_res], (emb,), jnp.float32) * 0.02
    # natural PyTorch flatten over (h major, l minor); matches the (B,H,L) trunk output
    p["lin_w"] = wl.reshape(emb, h * seq_len).astype(jnp.bfloat16)  # (E, D)
    p["lin_b"] = bl.reshape(emb, 1)                                 # (E, 1) f32
    return p


# ------------------------------ forward pass --------------------------------
def encoder_forward(x_ncl, params):
    B, Cin, L = x_ncl.shape
    x = jnp.transpose(x_ncl, (0, 2, 1)).astype(jnp.bfloat16)       # NCL -> NLC
    y = trunk_forward(x, params["conv_w"], params["conv_b"],
                      params["res_w"], params["res_b"])            # (B, H, L) bf16
    H = y.shape[1]
    xT = jnp.transpose(y, (1, 2, 0)).reshape(H * L, B)             # (D, B) bf16 (tiny)
    outT = dense_transposed_ktiled(params["lin_w"], xT, params["lin_b"])  # (E, B)
    return jnp.transpose(outT)                                      # (B, E) f32


# --------------------------- pure-JAX reference ------------------------------
def encoder_ref(x_ncl, params):
    """f32 reference with identical math (BN already folded into weights)."""
    x = jnp.transpose(x_ncl, (0, 2, 1)).astype(jnp.float32)        # (B, L, Cin)
    w0 = params["conv_w"].astype(jnp.float32)
    H = w0.shape[1]
    y = _celu(jnp.einsum("blc,ch->blh", x, w0) + params["conv_b"])
    n_conv = params["res_w"].shape[0]

    def conv5(a, wf, bf):
        w = wf.astype(jnp.float32).reshape(5, H, H)
        ap = jnp.pad(a, ((0, 0), (2, 2), (0, 0)))
        L = a.shape[1]
        out = bf
        for t in range(5):
            out = out + jnp.einsum("blc,co->blo", ap[:, t:t + L, :], w[t])
        return out

    for j in range(n_conv // 2):
        h = _celu(conv5(y, params["res_w"][2 * j], params["res_b"][2 * j]))
        y = _celu(conv5(h, params["res_w"][2 * j + 1], params["res_b"][2 * j + 1]) + y)

    B = x.shape[0]
    yT = jnp.transpose(y, (0, 2, 1)).reshape(B, -1)                # (B, H*L)
    wl = params["lin_w"].astype(jnp.float32)                       # (E, H*L)
    return yT @ wl.T + params["lin_b"][:, 0]


if __name__ == "__main__":
    B, CIN, L = 2, 4, 16          # batch, input channels (one-hot DNA), seq len
    H, E, NRES = 32, 16, 2        # h_channel, embedding_size, resblock_num

    key = jax.random.PRNGKey(0)
    kx, kp = jax.random.split(key)
    x = jax.random.normal(kx, (B, CIN, L), jnp.float32)  # PyTorch NCL input
    params = init_params(kp, CIN, H, E, L, NRES)

    fwd = jax.jit(encoder_forward)
    out = jax.block_until_ready(fwd(x, params))
    assert out.shape == (B, E), out.shape
    assert jnp.all(jnp.isfinite(out))

    ref = encoder_ref(x, params)
    assert jnp.allclose(out, ref, rtol=5e-2, atol=5e-2), (
        float(jnp.max(jnp.abs(out - ref))))
    print("KERNEL_OK")
</pallas_src>

<mosaic_0001>
module attributes {stable_mosaic.version = 11 : i64} {
  func.func @_trunk_kernel(%arg0: i32, %arg1: memref<1x16x4xbf16, #tpu.memory_space<vmem>>, %arg2: memref<4x32xbf16, #tpu.memory_space<vmem>>, %arg3: memref<1x32xf32, #tpu.memory_space<vmem>>, %arg4: memref<4x160x32xbf16, #tpu.memory_space<vmem>>, %arg5: memref<4x1x32xf32, #tpu.memory_space<vmem>>, %arg6: memref<1x32x16xbf16, #tpu.memory_space<vmem>>, %arg7: memref<32x32xf32, #tpu.memory_space<vmem>>) attributes {dimension_semantics = [#tpu.dimension_semantics<parallel>], iteration_bounds = array<i64: 2>, scalar_prefetch = 0 : i64, scratch_operands = 1 : i64, tpu.core_type = #tpu.core_type<tc>, window_params = [{transform_indices = @transform_0, window_bounds = array<i64: 1, 16, 4>}, {pipeline_mode = #tpu.pipeline_mode<synchronous>, transform_indices = @transform_1, window_bounds = array<i64: 4, 32>}, {pipeline_mode = #tpu.pipeline_mode<synchronous>, transform_indices = @transform_2, window_bounds = array<i64: 1, 32>}, {pipeline_mode = #tpu.pipeline_mode<synchronous>, transform_indices = @transform_3, window_bounds = array<i64: 4, 160, 32>}, {pipeline_mode = #tpu.pipeline_mode<synchronous>, transform_indices = @transform_4, window_bounds = array<i64: 4, 1, 32>}, {transform_indices = @transform_5, window_bounds = array<i64: 1, 32, 16>}]} {
    %cst = arith.constant 0.000000e+00 : f32
    %0 = vector.broadcast %cst : f32 to vector<8x32xf32>
    %c0 = arith.constant 0 : index
    %c0_0 = arith.constant 0 : index
    %1 = vector.load %arg7[%c0, %c0_0] : memref<32x32xf32, #tpu.memory_space<vmem>>, vector<8x32xf32>
    tpu.vector_store %arg7[%c0, %c0_0], %0 {strides = array<i32>} : memref<32x32xf32, #tpu.memory_space<vmem>>, vector<8x32xf32>,
    %cst_1 = arith.constant 0.000000e+00 : f32
    %2 = vector.broadcast %cst_1 : f32 to vector<8x32xf32>
    %c24 = arith.constant 24 : index
    %c0_2 = arith.constant 0 : index
    %3 = vector.load %arg7[%c24, %c0_2] : memref<32x32xf32, #tpu.memory_space<vmem>>, vector<8x32xf32>
    tpu.vector_store %arg7[%c24, %c0_2], %2 {strides = array<i32>} : memref<32x32xf32, #tpu.memory_space<vmem>>, vector<8x32xf32>,
    %c0_3 = arith.constant 0 : index
    %c0_4 = arith.constant 0 : index
    %c0_5 = arith.constant 0 : index
    %4 = vector.load %arg1[%c0_3, %c0_4, %c0_5] : memref<1x16x4xbf16, #tpu.memory_space<vmem>>, vector<1x16x4xbf16>
    %5 = vector.shape_cast %4 : vector<1x16x4xbf16> to vector<16x4xbf16>
    %c0_6 = arith.constant 0 : index
    %c0_7 = arith.constant 0 : index
    %6 = vector.load %arg2[%c0_6, %c0_7] : memref<4x32xbf16, #tpu.memory_space<vmem>>, vector<4x32xbf16>
    %cst_8 = arith.constant dense<0.000000e+00> : vector<16x32xf32>
    %7 = tpu.matmul %5, %6, %cst_8 {dimension_numbers = #tpu.dot_dimension_numbers<[1], [0], [0], [1], [0, 0, 1, 1], [], []>} : vector<16x4xbf16>, vector<4x32xbf16>, vector<16x32xf32> -> vector<16x32xf32>
    %c0_9 = arith.constant 0 : index
    %c0_10 = arith.constant 0 : index
    %8 = vector.load %arg3[%c0_9, %c0_10] : memref<1x32xf32, #tpu.memory_space<vmem>>, vector<1x32xf32>
    %9 = vector.broadcast %8 : vector<1x32xf32> to vector<16x32xf32>
    %10 = arith.addf %7, %9 : vector<16x32xf32>
    %cst_11 = arith.constant 0.000000e+00 : f32
    %11 = vector.broadcast %cst_11 : f32 to vector<16x32xf32>
    %12 = arith.cmpf ogt, %10, %11 : vector<16x32xf32>
    %cst_12 = arith.constant 0.000000e+00 : f32
    %13 = vector.broadcast %cst_12 : f32 to vector<16x32xf32>
    %14 = arith.minimumf %10, %13 : vector<16x32xf32>
    %15 = math.exp %14 : vector<16x32xf32>
    %cst_13 = arith.constant 1.000000e+00 : f32
    %16 = vector.broadcast %cst_13 : f32 to vector<16x32xf32>
    %17 = arith.subf %15, %16 : vector<16x32xf32>
    %18 = arith.select %12, %10, %17 : vector<16x32xi1>, vector<16x32xf32>
    %c0_i32 = arith.constant 0 : i32
    %c2_i32 = arith.constant 2 : i32
    %19 = arith.muli %c2_i32, %c0_i32 : i32
    %20 = arith.index_cast %19 : i32 to index
    %c0_14 = arith.constant 0 : index
    %c0_15 = arith.constant 0 : index
    %21 = vector.load %arg4[%20, %c0_14, %c0_15] : memref<4x160x32xbf16, #tpu.memory_space<vmem>>, vector<1x160x32xbf16>
    %22 = vector.shape_cast %21 : vector<1x160x32xbf16> to vector<160x32xbf16>
    %c2_i32_16 = arith.constant 2 : i32
    %23 = arith.muli %c2_i32_16, %c0_i32 : i32
    %24 = arith.index_cast %23 : i32 to index
    %c0_17 = arith.constant 0 : index
    %c0_18 = arith.constant 0 : index
    %25 = vector.load %arg5[%24, %c0_17, %c0_18] : memref<4x1x32xf32, #tpu.memory_space<vmem>>, vector<1x1x32xf32>
    %26 = vector.shape_cast %25 : vector<1x1x32xf32> to vector<1x32xf32>
    %c8 = arith.constant 8 : index
    %c0_19 = arith.constant 0 : index
    %27 = vector.load %arg7[%c8, %c0_19] : memref<32x32xf32, #tpu.memory_space<vmem>>, vector<16x32xf32>
    tpu.vector_store %arg7[%c8, %c0_19], %18 {strides = array<i32>} : memref<32x32xf32, #tpu.memory_space<vmem>>, vector<16x32xf32>,
    %c6 = arith.constant 6 : index
    %c0_20 = arith.constant 0 : index
    %28 = vector.load %arg7[%c6, %c0_20] : memref<32x32xf32, #tpu.memory_space<vmem>>, vector<16x32xf32>
    %c7 = arith.constant 7 : index
    %c0_21 = arith.constant 0 : index
    %29 = vector.load %arg7[%c7, %c0_21] : memref<32x32xf32, #tpu.memory_space<vmem>>, vector<16x32xf32>
    %c8_22 = arith.constant 8 : index
    %c0_23 = arith.constant 0 : index
    %30 = vector.load %arg7[%c8_22, %c0_23] : memref<32x32xf32, #tpu.memory_space<vmem>>, vector<16x32xf32>
    %c9 = arith.constant 9 : index
    %c0_24 = arith.constant 0 : index
    %31 = vector.load %arg7[%c9, %c0_24] : memref<32x32xf32, #tpu.memory_space<vmem>>, vector<16x32xf32>
    %c10 = arith.constant 10 : index
    %c0_25 = arith.constant 0 : index
    %32 = vector.load %arg7[%c10, %c0_25] : memref<32x32xf32, #tpu.memory_space<vmem>>, vector<16x32xf32>
    %33 = tpu.concatenate %28, %29, %30, %31, %32 in 1 : vector<16x32xf32>, vector<16x32xf32>, vector<16x32xf32>, vector<16x32xf32>, vector<16x32xf32> -> vector<16x160xf32>
    %34 = arith.truncf %33 : vector<16x160xf32> to vector<16x160xbf16>
    %cst_26 = arith.constant dense<0.000000e+00> : vector<16x32xf32>
    %35 = tpu.matmul %34, %22, %cst_26 {dimension_numbers = #tpu.dot_dimension_numbers<[1], [0], [0], [1], [0, 0, 1, 1], [], []>} : vector<16x160xbf16>, vector<160x32xbf16>, vector<16x32xf32> -> vector<16x32xf32>
    %36 = vector.broadcast %26 : vector<1x32xf32> to vector<16x32xf32>
    %37 = arith.addf %35, %36 : vector<16x32xf32>
    %cst_27 = arith.constant 0.000000e+00 : f32
    %38 = vector.broadcast %cst_27 : f32 to vector<16x32xf32>
    %39 = arith.addf %37, %38 : vector<16x32xf32>
    %cst_28 = arith.constant 0.000000e+00 : f32
    %40 = vector.broadcast %cst_28 : f32 to vector<16x32xf32>
    %41 = arith.cmpf ogt, %39, %40 : vector<16x32xf32>
    %cst_29 = arith.constant 0.000000e+00 : f32
    %42 = vector.broadcast %cst_29 : f32 to vector<16x32xf32>
    %43 = arith.minimumf %39, %42 : vector<16x32xf32>
    %44 = math.exp %43 : vector<16x32xf32>
    %cst_30 = arith.constant 1.000000e+00 : f32
    %45 = vector.broadcast %cst_30 : f32 to vector<16x32xf32>
    %46 = arith.subf %44, %45 : vector<16x32xf32>
    %47 = arith.select %41, %39, %46 : vector<16x32xi1>, vector<16x32xf32>
    %c2_i32_31 = arith.constant 2 : i32
    %48 = arith.muli %c2_i32_31, %c0_i32 : i32
    %c1_i32 = arith.constant 1 : i32
    %49 = arith.addi %48, %c1_i32 : i32
    %50 = arith.index_cast %49 : i32 to index
    %c0_32 = arith.constant 0 : index
    %c0_33 = arith.constant 0 : index
    %51 = vector.load %arg4[%50, %c0_32, %c0_33] : memref<4x160x32xbf16, #tpu.memory_space<vmem>>, vector<1x160x32xbf16>
    %52 = vector.shape_cast %51 : vector<1x160x32xbf16> to vector<160x32xbf16>
    %c2_i32_34 = arith.constant 2 : i32
    %53 = arith.muli %c2_i32_34, %c0_i32 : i32
    %c1_i32_35 = arith.constant 1 : i32
    %54 = arith.addi %53, %c1_i32_35 : i32
    %55 = arith.index_cast %54 : i32 to index
    %c0_36 = arith.constant 0 : index
    %c0_37 = arith.constant 0 : index
    %56 = vector.load %arg5[%55, %c0_36, %c0_37] : memref<4x1x32xf32, #tpu.memory_space<vmem>>, vector<1x1x32xf32>
    %57 = vector.shape_cast %56 : vector<1x1x32xf32> to vector<1x32xf32>
    %c8_38 = arith.constant 8 : index
    %c0_39 = arith.constant 0 : index
    %58 = vector.load %arg7[%c8_38, %c0_39] : memref<32x32xf32, #tpu.memory_space<vmem>>, vector<16x32xf32>
    tpu.vector_store %arg7[%c8_38, %c0_39], %47 {strides = array<i32>} : memref<32x32xf32, #tpu.memory_space<vmem>>, vector<16x32xf32>,
    %c6_40 = arith.constant 6 : index
    %c0_41 = arith.constant 0 : index
    %59 = vector.load %arg7[%c6_40, %c0_41] : memref<32x32xf32, #tpu.memory_space<vmem>>, vector<16x32xf32>
    %c7_42 = arith.constant 7 : index
    %c0_43 = arith.constant 0 : index
    %60 = vector.load %arg7[%c7_42, %c0_43] : memref<32x32xf32, #tpu.memory_space<vmem>>, vector<16x32xf32>
    %c8_44 = arith.constant 8 : index
    %c0_45 = arith.constant 0 : index
    %61 = vector.load %arg7[%c8_44, %c0_45] : memref<32x32xf32, #tpu.memory_space<vmem>>, vector<16x32xf32>
    %c9_46 = arith.constant 9 : index
    %c0_47 = arith.constant 0 : index
    %62 = vector.load %arg7[%c9_46, %c0_47] : memref<32x32xf32, #tpu.memory_space<vmem>>, vector<16x32xf32>
    %c10_48 = arith.constant 10 : index
    %c0_49 = arith.constant 0 : index
    %63 = vector.load %arg7[%c10_48, %c0_49] : memref<32x32xf32, #tpu.memory_space<vmem>>, vector<16x32xf32>
    %64 = tpu.concatenate %59, %60, %61, %62, %63 in 1 : vector<16x32xf32>, vector<16x32xf32>, vector<16x32xf32>, vector<16x32xf32>, vector<16x32xf32> -> vector<16x160xf32>
    %65 = arith.truncf %64 : vector<16x160xf32> to vector<16x160xbf16>
    %cst_50 = arith.constant dense<0.000000e+00> : vector<16x32xf32>
    %66 = tpu.matmul %65, %52, %cst_50 {dimension_numbers = #tpu.dot_dimension_numbers<[1], [0], [0], [1], [0, 0, 1, 1], [], []>} : vector<16x160xbf16>, vector<160x32xbf16>, vector<16x32xf32> -> vector<16x32xf32>
    %67 = vector.broadcast %57 : vector<1x32xf32> to vector<16x32xf32>
    %68 = arith.addf %66, %67 : vector<16x32xf32>
    %69 = arith.addf %68, %18 : vector<16x32xf32>
    %cst_51 = arith.constant 0.000000e+00 : f32
    %70 = vector.broadcast %cst_51 : f32 to vector<16x32xf32>
    %71 = arith.cmpf ogt, %69, %70 : vector<16x32xf32>
    %cst_52 = arith.constant 0.000000e+00 : f32
    %72 = vector.broadcast %cst_52 : f32 to vector<16x32xf32>
    %73 = arith.minimumf %69, %72 : vector<16x32xf32>
    %74 = math.exp %73 : vector<16x32xf32>
    %cst_53 = arith.constant 1.000000e+00 : f32
    %75 = vector.broadcast %cst_53 : f32 to vector<16x32xf32>
    %76 = arith.subf %74, %75 : vector<16x32xf32>
    %77 = arith.select %71, %69, %76 : vector<16x32xi1>, vector<16x32xf32>
    %c1_i32_54 = arith.constant 1 : i32
    %c2_i32_55 = arith.constant 2 : i32
    %78 = arith.muli %c2_i32_55, %c1_i32_54 : i32
    %79 = arith.index_cast %78 : i32 to index
    %c0_56 = arith.constant 0 : index
    %c0_57 = arith.constant 0 : index
    %80 = vector.load %arg4[%79, %c0_56, %c0_57] : memref<4x160x32xbf16, #tpu.memory_space<vmem>>, vector<1x160x32xbf16>
    %81 = vector.shape_cast %80 : vector<1x160x32xbf16> to vector<160x32xbf16>
    %c2_i32_58 = arith.constant 2 : i32
    %82 = arith.muli %c2_i32_58, %c1_i32_54 : i32
    %83 = arith.index_cast %82 : i32 to index
    %c0_59 = arith.constant 0 : index
    %c0_60 = arith.constant 0 : index
    %84 = vector.load %arg5[%83, %c0_59, %c0_60] : memref<4x1x32xf32, #tpu.memory_space<vmem>>, vector<1x1x32xf32>
    %85 = vector.shape_cast %84 : vector<1x1x32xf32> to vector<1x32xf32>
    %c8_61 = arith.constant 8 : index
    %c0_62 = arith.constant 0 : index
    %86 = vector.load %arg7[%c8_61, %c0_62] : memref<32x32xf32, #tpu.memory_space<vmem>>, vector<16x32xf32>
    tpu.vector_store %arg7[%c8_61, %c0_62], %77 {strides = array<i32>} : memref<32x32xf32, #tpu.memory_space<vmem>>, vector<16x32xf32>,
    %c6_63 = arith.constant 6 : index
    %c0_64 = arith.constant 0 : index
    %87 = vector.load %arg7[%c6_63, %c0_64] : memref<32x32xf32, #tpu.memory_space<vmem>>, vector<16x32xf32>
    %c7_65 = arith.constant 7 : index
    %c0_66 = arith.constant 0 : index
    %88 = vector.load %arg7[%c7_65, %c0_66] : memref<32x32xf32, #tpu.memory_space<vmem>>, vector<16x32xf32>
    %c8_67 = arith.constant 8 : index
    %c0_68 = arith.constant 0 : index
    %89 = vector.load %arg7[%c8_67, %c0_68] : memref<32x32xf32, #tpu.memory_space<vmem>>, vector<16x32xf32>
    %c9_69 = arith.constant 9 : index
    %c0_70 = arith.constant 0 : index
    %90 = vector.load %arg7[%c9_69, %c0_70] : memref<32x32xf32, #tpu.memory_space<vmem>>, vector<16x32xf32>
    %c10_71 = arith.constant 10 : index
    %c0_72 = arith.constant 0 : index
    %91 = vector.load %arg7[%c10_71, %c0_72] : memref<32x32xf32, #tpu.memory_space<vmem>>, vector<16x32xf32>
    %92 = tpu.concatenate %87, %88, %89, %90, %91 in 1 : vector<16x32xf32>, vector<16x32xf32>, vector<16x32xf32>, vector<16x32xf32>, vector<16x32xf32> -> vector<16x160xf32>
    %93 = arith.truncf %92 : vector<16x160xf32> to vector<16x160xbf16>
    %cst_73 = arith.constant dense<0.000000e+00> : vector<16x32xf32>
    %94 = tpu.matmul %93, %81, %cst_73 {dimension_numbers = #tpu.dot_dimension_numbers<[1], [0], [0], [1], [0, 0, 1, 1], [], []>} : vector<16x160xbf16>, vector<160x32xbf16>, vector<16x32xf32> -> vector<16x32xf32>
    %95 = vector.broadcast %85 : vector<1x32xf32> to vector<16x32xf32>
    %96 = arith.addf %94, %95 : vector<16x32xf32>
    %cst_74 = arith.constant 0.000000e+00 : f32
    %97 = vector.broadcast %cst_74 : f32 to vector<16x32xf32>
    %98 = arith.addf %96, %97 : vector<16x32xf32>
    %cst_75 = arith.constant 0.000000e+00 : f32
    %99 = vector.broadcast %cst_75 : f32 to vector<16x32xf32>
    %100 = arith.cmpf ogt, %98, %99 : vector<16x32xf32>
    %cst_76 = arith.constant 0.000000e+00 : f32
    %101 = vector.broadcast %cst_76 : f32 to vector<16x32xf32>
    %102 = arith.minimumf %98, %101 : vector<16x32xf32>
    %103 = math.exp %102 : vector<16x32xf32>
    %cst_77 = arith.constant 1.000000e+00 : f32
    %104 = vector.broadcast %cst_77 : f32 to vector<16x32xf32>
    %105 = arith.subf %103, %104 : vector<16x32xf32>
    %106 = arith.select %100, %98, %105 : vector<16x32xi1>, vector<16x32xf32>
    %c2_i32_78 = arith.constant 2 : i32
    %107 = arith.muli %c2_i32_78, %c1_i32_54 : i32
    %c1_i32_79 = arith.constant 1 : i32
    %108 = arith.addi %107, %c1_i32_79 : i32
    %109 = arith.index_cast %108 : i32 to index
    %c0_80 = arith.constant 0 : index
    %c0_81 = arith.constant 0 : index
    %110 = vector.load %arg4[%109, %c0_80, %c0_81] : memref<4x160x32xbf16, #tpu.memory_space<vmem>>, vector<1x160x32xbf16>
    %111 = vector.shape_cast %110 : vector<1x160x32xbf16> to vector<160x32xbf16>
    %c2_i32_82 = arith.constant 2 : i32
    %112 = arith.muli %c2_i32_82, %c1_i32_54 : i32
    %c1_i32_83 = arith.constant 1 : i32
    %113 = arith.addi %112, %c1_i32_83 : i32
    %114 = arith.index_cast %113 : i32 to index
    %c0_84 = arith.constant 0 : index
    %c0_85 = arith.constant 0 : index
    %115 = vector.load %arg5[%114, %c0_84, %c0_85] : memref<4x1x32xf32, #tpu.memory_space<vmem>>, vector<1x1x32xf32>
    %116 = vector.shape_cast %115 : vector<1x1x32xf32> to vector<1x32xf32>
    %c8_86 = arith.constant 8 : index
    %c0_87 = arith.constant 0 : index
    %117 = vector.load %arg7[%c8_86, %c0_87] : memref<32x32xf32, #tpu.memory_space<vmem>>, vector<16x32xf32>
    tpu.vector_store %arg7[%c8_86, %c0_87], %106 {strides = array<i32>} : memref<32x32xf32, #tpu.memory_space<vmem>>, vector<16x32xf32>,
    %c6_88 = arith.constant 6 : index
    %c0_89 = arith.constant 0 : index
    %118 = vector.load %arg7[%c6_88, %c0_89] : memref<32x32xf32, #tpu.memory_space<vmem>>, vector<16x32xf32>
    %c7_90 = arith.constant 7 : index
    %c0_91 = arith.constant 0 : index
    %119 = vector.load %arg7[%c7_90, %c0_91] : memref<32x32xf32, #tpu.memory_space<vmem>>, vector<16x32xf32>
    %c8_92 = arith.constant 8 : index
    %c0_93 = arith.constant 0 : index
    %120 = vector.load %arg7[%c8_92, %c0_93] : memref<32x32xf32, #tpu.memory_space<vmem>>, vector<16x32xf32>
    %c9_94 = arith.constant 9 : index
    %c0_95 = arith.constant 0 : index
    %121 = vector.load %arg7[%c9_94, %c0_95] : memref<32x32xf32, #tpu.memory_space<vmem>>, vector<16x32xf32>
    %c10_96 = arith.constant 10 : index
    %c0_97 = arith.constant 0 : index
    %122 = vector.load %arg7[%c10_96, %c0_97] : memref<32x32xf32, #tpu.memory_space<vmem>>, vector<16x32xf32>
    %123 = tpu.concatenate %118, %119, %120, %121, %122 in 1 : vector<16x32xf32>, vector<16x32xf32>, vector<16x32xf32>, vector<16x32xf32>, vector<16x32xf32> -> vector<16x160xf32>
    %124 = arith.truncf %123 : vector<16x160xf32> to vector<16x160xbf16>
    %cst_98 = arith.constant dense<0.000000e+00> : vector<16x32xf32>
    %125 = tpu.matmul %124, %111, %cst_98 {dimension_numbers = #tpu.dot_dimension_numbers<[1], [0], [0], [1], [0, 0, 1, 1], [], []>} : vector<16x160xbf16>, vector<160x32xbf16>, vector<16x32xf32> -> vector<16x32xf32>
    %126 = vector.broadcast %116 : vector<1x32xf32> to vector<16x32xf32>
    %127 = arith.addf %125, %126 : vector<16x32xf32>
    %128 = arith.addf %127, %77 : vector<16x32xf32>
    %cst_99 = arith.constant 0.000000e+00 : f32
    %129 = vector.broadcast %cst_99 : f32 to vector<16x32xf32>
    %130 = arith.cmpf ogt, %128, %129 : vector<16x32xf32>
    %cst_100 = arith.constant 0.000000e+00 : f32
    %131 = vector.broadcast %cst_100 : f32 to vector<16x32xf32>
    %132 = arith.minimumf %128, %131 : vector<16x32xf32>
    %133 = math.exp %132 : vector<16x32xf32>
    %cst_101 = arith.constant 1.000000e+00 : f32
    %134 = vector.broadcast %cst_101 : f32 to vector<16x32xf32>
    %135 = arith.subf %133, %134 : vector<16x32xf32>
    %136 = arith.select %130, %128, %135 : vector<16x32xi1>, vector<16x32xf32>
    %c2_i32_102 = arith.constant 2 : i32
    %137 = tpu.transpose %136, [1, 0] : vector<16x32xf32> -> vector<32x16xf32>
    %138 = arith.truncf %137 : vector<32x16xf32> to vector<32x16xbf16>
    %c0_103 = arith.constant 0 : index
    %c0_104 = arith.constant 0 : index
    %c0_105 = arith.constant 0 : index
    %139 = vector.load %arg6[%c0_103, %c0_104, %c0_105] : memref<1x32x16xbf16, #tpu.memory_space<vmem>>, vector<1x32x16xbf16>
    %140 = vector.shape_cast %139 : vector<1x32x16xbf16> to vector<32x16xbf16>
    %141 = vector.shape_cast %138 : vector<32x16xbf16> to vector<1x32x16xbf16>
    tpu.vector_store %arg6[%c0_103, %c0_104, %c0_105], %141 {strides = array<i32>} : memref<1x32x16xbf16, #tpu.memory_space<vmem>>, vector<1x32x16xbf16>,
    return
  }
  func.func @transform_0(%arg0: i32) -> (i32, i32, i32) {
    %c0_i32 = arith.constant 0 : i32
    %c0_i32_0 = arith.constant 0 : i32
    %c0_i32_1 = arith.constant 0 : i32
    return %arg0, %c0_i32, %c0_i32_0 : i32, i32, i32
  }
  func.func @transform_1(%arg0: i32) -> (i32, i32) {
    %c0_i32 = arith.constant 0 : i32
    %c0_i32_0 = arith.constant 0 : i32
    %c0_i32_1 = arith.constant 0 : i32
    return %c0_i32, %c0_i32_0 : i32, i32
  }
  func.func @transform_2(%arg0: i32) -> (i32, i32) {
    %c0_i32 = arith.constant 0 : i32
    %c0_i32_0 = arith.constant 0 : i32
    %c0_i32_1 = arith.constant 0 : i32
    return %c0_i32, %c0_i32_0 : i32, i32
  }
  func.func @transform_3(%arg0: i32) -> (i32, i32, i32) {
    %c0_i32 = arith.constant 0 : i32
    %c0_i32_0 = arith.constant 0 : i32
    %c0_i32_1 = arith.constant 0 : i32
    %c0_i32_2 = arith.constant 0 : i32
    return %c0_i32, %c0_i32_0, %c0_i32_1 : i32, i32, i32
  }
  func.func @transform_4(%arg0: i32) -> (i32, i32, i32) {
    %c0_i32 = arith.constant 0 : i32
    %c0_i32_0 = arith.constant 0 : i32
    %c0_i32_1 = arith.constant 0 : i32
    %c0_i32_2 = arith.constant 0 : i32
    return %c0_i32, %c0_i32_0, %c0_i32_1 : i32, i32, i32
  }
  func.func @transform_5(%arg0: i32) -> (i32, i32, i32) {
    %c0_i32 = arith.constant 0 : i32
    %c0_i32_0 = arith.constant 0 : i32
    %c0_i32_1 = arith.constant 0 : i32
    return %arg0, %c0_i32, %c0_i32_0 : i32, i32, i32
  }
}

module attributes {stable_mosaic.version = 11 : i64} {
  func.func @_dense_kernel(%arg0: i32, %arg1: memref<16x512xbf16, #tpu.memory_space<vmem>>, %arg2: memref<512x2xbf16, #tpu.memory_space<vmem>>, %arg3: memref<16x1xf32, #tpu.memory_space<vmem>>, %arg4: memref<16x2xf32, #tpu.memory_space<vmem>>, %arg5: memref<16x2xf32, #tpu.memory_space<vmem>>) attributes {dimension_semantics = [#tpu.dimension_semantics<arbitrary>], iteration_bounds = array<i64: 1>, scalar_prefetch = 0 : i64, scratch_operands = 1 : i64, tpu.core_type = #tpu.core_type<tc>, window_params = [{transform_indices = @transform_0, window_bounds = array<i64: 16, 512>}, {transform_indices = @transform_1, window_bounds = array<i64: 512, 2>}, {pipeline_mode = #tpu.pipeline_mode<synchronous>, transform_indices = @transform_2, window_bounds = array<i64: 16, 1>}, {pipeline_mode = #tpu.pipeline_mode<synchronous>, transform_indices = @transform_3, window_bounds = array<i64: 16, 2>}]} {
    %c0_i32 = arith.constant 0 : i32
    %0 = arith.cmpi eq, %arg0, %c0_i32 : i32
    %1 = arith.extui %0 : i1 to i32
    %c0_i32_0 = arith.constant 0 : i32
    %2 = arith.cmpi ne, %1, %c0_i32_0 : i32
    scf.if %2 {
      %cst_10 = arith.constant 0.000000e+00 : f32
      %12 = vector.broadcast %cst_10 : f32 to vector<16x2xf32>
      %c0_11 = arith.constant 0 : index
      %c0_12 = arith.constant 0 : index
      %13 = vector.load %arg5[%c0_11, %c0_12] : memref<16x2xf32, #tpu.memory_space<vmem>>, vector<16x2xf32>
      tpu.vector_store %arg5[%c0_11, %c0_12], %12 {strides = array<i32>} : memref<16x2xf32, #tpu.memory_space<vmem>>, vector<16x2xf32>,
    } else {
    }
    %c0 = arith.constant 0 : index
    %c0_1 = arith.constant 0 : index
    %3 = vector.load %arg5[%c0, %c0_1] : memref<16x2xf32, #tpu.memory_space<vmem>>, vector<16x2xf32>
    %c0_2 = arith.constant 0 : index
    %c0_3 = arith.constant 0 : index
    %4 = vector.load %arg1[%c0_2, %c0_3] : memref<16x512xbf16, #tpu.memory_space<vmem>>, vector<16x512xbf16>
    %c0_4 = arith.constant 0 : index
    %c0_5 = arith.constant 0 : index
    %5 = vector.load %arg2[%c0_4, %c0_5] : memref<512x2xbf16, #tpu.memory_space<vmem>>, vector<512x2xbf16>
    %cst = arith.constant dense<0.000000e+00> : vector<16x2xf32>
    %6 = tpu.matmul %4, %5, %cst {dimension_numbers = #tpu.dot_dimension_numbers<[1], [0], [0], [1], [0, 0, 1, 1], [], []>} : vector<16x512xbf16>, vector<512x2xbf16>, vector<16x2xf32> -> vector<16x2xf32>
    %7 = arith.addf %3, %6 : vector<16x2xf32>
    %c0_6 = arith.constant 0 : index
    %c0_7 = arith.constant 0 : index
    %8 = vector.load %arg5[%c0_6, %c0_7] : memref<16x2xf32, #tpu.memory_space<vmem>>, vector<16x2xf32>
    tpu.vector_store %arg5[%c0_6, %c0_7], %7 {strides = array<i32>} : memref<16x2xf32, #tpu.memory_space<vmem>>, vector<16x2xf32>,
    %c0_i32_8 = arith.constant 0 : i32
    %9 = arith.cmpi eq, %arg0, %c0_i32_8 : i32
    %10 = arith.extui %9 : i1 to i32
    %c0_i32_9 = arith.constant 0 : i32
    %11 = arith.cmpi ne, %10, %c0_i32_9 : i32
    scf.if %11 {
      %c0_10 = arith.constant 0 : index
      %c0_11 = arith.constant 0 : index
      %12 = vector.load %arg5[%c0_10, %c0_11] : memref<16x2xf32, #tpu.memory_space<vmem>>, vector<16x2xf32>
      %c0_12 = arith.constant 0 : index
      %c0_13 = arith.constant 0 : index
      %13 = vector.load %arg3[%c0_12, %c0_13] : memref<16x1xf32, #tpu.memory_space<vmem>>, vector<16x1xf32>
      %14 = vector.broadcast %13 : vector<16x1xf32> to vector<16x2xf32>
      %15 = arith.addf %12, %14 : vector<16x2xf32>
      %c0_14 = arith.constant 0 : index
      %c0_15 = arith.constant 0 : index
      %16 = vector.load %arg4[%c0_14, %c0_15] : memref<16x2xf32, #tpu.memory_space<vmem>>, vector<16x2xf32>
      tpu.vector_store %arg4[%c0_14, %c0_15], %15 {strides = array<i32>} : memref<16x2xf32, #tpu.memory_space<vmem>>, vector<16x2xf32>,
    } else {
    }
    return
  }
  func.func @transform_0(%arg0: i32) -> (i32, i32) {
    %c0_i32 = arith.constant 0 : i32
    %c0_i32_0 = arith.constant 0 : i32
    return %c0_i32, %arg0 : i32, i32
  }
  func.func @transform_1(%arg0: i32) -> (i32, i32) {
    %c0_i32 = arith.constant 0 : i32
    %c0_i32_0 = arith.constant 0 : i32
    return %arg0, %c0_i32 : i32, i32
  }
  func.func @transform_2(%arg0: i32) -> (i32, i32) {
    %c0_i32 = arith.constant 0 : i32
    %c0_i32_0 = arith.constant 0 : i32
    %c0_i32_1 = arith.constant 0 : i32
    return %c0_i32, %c0_i32_0 : i32, i32
  }
  func.func @transform_3(%arg0: i32) -> (i32, i32) {
    %c0_i32 = arith.constant 0 : i32
    %c0_i32_0 = arith.constant 0 : i32
    %c0_i32_1 = arith.constant 0 : i32
    return %c0_i32, %c0_i32_0 : i32, i32
  }
}

</mosaic_0001>

<bundles_post_ra>
// kernel: encoder_forward.3
= control target key start
LH: loop header
LB: loop body
LE: loop exit
PB: predicated region body
PF: predicated region fallthrough
CT: control target
= control target key end

     0   :  { %v572_v8 = vmov 0   ;;  %vm18_vm0 = vcmask 15360   ;;  %v573_v47 = vmov 0.0   ;;  %s732_s1 = inlined_call_operand.vmem [shape: bf16[512,2], index: 1, kind: input, shape index: {}]   ;;  %s733_s2 = inlined_call_operand.vmem [shape: f32[16,1], index: 2, kind: input, shape index: {}]   ;;  %s734_s0 = inlined_call_operand.vmem [shape: bf16[16,512], index: 0, kind: input, shape index: {}]   ;;  %s735_s3 = inlined_call_operand.vmem [shape: f32[16,2], index: 3, kind: output, shape index: {}]  }
   0x1   :  { %v544_v0 = vld [vmem:[%s732_s1 + $0x38] sm:$0xff]  ;;  %v543_v4 = vld [vmem:[%s732_s1 + $0x30] sm:$0xff]  ;;  %571 = vset.pattern.permute.xlu0 %v572_v8  ;;  %v542_v9 = vld [vmem:[%s732_s1 + $0x28] sm:$0xff]  ;;  %19 = vst.msk [vmem:[#allocation2] sm:$0xff] %vm18_vm0, %v573_v47 }
   0x2   :  { %v552_v1 = vld [vmem:[%s732_s1 + $0x78] sm:$0xff]  ;;  %303 = vmatpush.bf16.msra.mxu0 %v544_v0  ;;  %v551_v5 = vld [vmem:[%s732_s1 + $0x70] sm:$0xff]  ;;  %v550_v10 = vld [vmem:[%s732_s1 + $0x68] sm:$0xff]  ;;  %20 = vst.msk [vmem:[#allocation2 + $0x8] sm:$0xff] %vm18_vm0, %v573_v47 }
   0x3   :  { %v560_v2 = vld [vmem:[%s732_s1 + $0xb8] sm:$0xff]  ;;  %317 = vmatpush.bf16.msra.mxu1 %v552_v1  ;;  %v559_v6 = vld [vmem:[%s732_s1 + $0xb0] sm:$0xff]  ;;  %v558_v11 = vld [vmem:[%s732_s1 + $0xa8] sm:$0xff] }
   0x4   :  { %v568_v3 = vld [vmem:[%s732_s1 + $0xf8] sm:$0xff]  ;;  %331 = vmatpush.bf16.msra.mxu2 %v560_v2  ;;  %v567_v7 = vld [vmem:[%s732_s1 + $0xf0] sm:$0xff]  ;;  %v566_v12 = vld [vmem:[%s732_s1 + $0xe8] sm:$0xff] }
   0x5   :  { %345 = vmatpush.bf16.msra.mxu3 %v568_v3  ;;  %v541_v13 = vld [vmem:[%s732_s1 + $0x20] sm:$0xff]  ;;  %v540_v18 = vld [vmem:[%s732_s1 + $0x18] sm:$0xff]  ;;  %v539_v22 = vld [vmem:[%s732_s1 + $0x10] sm:$0xff] }
   0x6   :  { %304 = vmatpush.bf16.msra.mxu0 %v543_v4  ;;  %v549_v14 = vld [vmem:[%s732_s1 + $0x60] sm:$0xff]  ;;  %v548_v19 = vld [vmem:[%s732_s1 + $0x58] sm:$0xff]  ;;  %v547_v23 = vld [vmem:[%s732_s1 + $0x50] sm:$0xff] }
   0x7   :  { %318 = vmatpush.bf16.msra.mxu1 %v551_v5  ;;  %v557_v15 = vld [vmem:[%s732_s1 + $0xa0] sm:$0xff]  ;;  %v556_v20 = vld [vmem:[%s732_s1 + $0x98] sm:$0xff]  ;;  %v555_v24 = vld [vmem:[%s732_s1 + $0x90] sm:$0xff] }
   0x8   :  { %332 = vmatpush.bf16.msra.mxu2 %v559_v6  ;;  %v565_v16 = vld [vmem:[%s732_s1 + $0xe0] sm:$0xff]  ;;  %v564_v21 = vld [vmem:[%s732_s1 + $0xd8] sm:$0xff]  ;;  %v563_v25 = vld [vmem:[%s732_s1 + $0xd0] sm:$0xff] }
   0x9   :  { %346 = vmatpush.bf16.msra.mxu3 %v567_v7  ;;  %v369_v17 = vld [vmem:[%s733_s2] sm:$0xff]  ;;  %v370_v26 = vld [vmem:[%s733_s2 + $0x8] sm:$0xff]  ;;  %v535_v36 = vld [vmem:[%s734_s0 + $0xc] sm:$0xf0] }
   0xa   :  { %305 = vmatpush.bf16.msra.mxu0 %v542_v9  ;;  %373 = vperm.xlu0 %571, %v369_v17   ;;  %v538_v27 = vld [vmem:[%s732_s1 + $0x8] sm:$0xff]  ;;  %v537_v31 = vld [vmem:[%s732_s1] sm:$0xff]  ;;  %v393_v38 = vld [vmem:[%s734_s0 + $0x10] sm:$0xf0] }
   0xb   :  { %319 = vmatpush.bf16.msra.mxu1 %v550_v10  ;;  %v546_v28 = vld [vmem:[%s732_s1 + $0x48] sm:$0xff]  ;;  %v545_v32 = vld [vmem:[%s732_s1 + $0x40] sm:$0xff]  ;;  %v536_v40 = vld [vmem:[%s734_s0 + $0x14] sm:$0xf0] }
   0xc   :  { %333 = vmatpush.bf16.msra.mxu2 %v558_v11  ;;  %v554_v29 = vld [vmem:[%s732_s1 + $0x88] sm:$0xff]  ;;  %v553_v33 = vld [vmem:[%s732_s1 + $0x80] sm:$0xff]  ;;  %v401_v42 = vld [vmem:[%s734_s0 + $0x18] sm:$0xf0] }
   0xd   :  { %347 = vmatpush.bf16.msra.mxu3 %v566_v12  ;;  %v562_v30 = vld [vmem:[%s732_s1 + $0xc8] sm:$0xff]  ;;  %v561_v34 = vld [vmem:[%s732_s1 + $0xc0] sm:$0xff] }
   0xe   :  { %306 = vmatpush.bf16.msra.mxu0 %v541_v13  ;;  %v391_v35 = vld [vmem:[%s734_s0] sm:$0xf]  ;;  %v533_v37 = vld [vmem:[%s734_s0 + $0x4] sm:$0xf]  ;;  %v399_v39 = vld [vmem:[%s734_s0 + $0x8] sm:$0xf] }
   0xf   :  { %320 = vmatpush.bf16.msra.mxu1 %v549_v14  ;;  %v534_v41 = vld [vmem:[%s734_s0 + $0xc] sm:$0xf]  ;;  %v392_v43 = vor.u32 %v535_v36, %v391_v35  ;;  %v396_v44 = vor.u32 %v533_v37, %v393_v38  ;;  %v400_v45 = vor.u32 %v536_v40, %v399_v39  ;;  %v21_v54 = vld [vmem:[#allocation2] sm:$0xff] }
  0x10   :  { %334 = vmatpush.bf16.msra.mxu2 %v557_v15  ;;  %v404_v46 = vor.u32 %v534_v41, %v401_v42  ;;  %v22_v62 = vld [vmem:[#allocation2 + $0x8] sm:$0xff] }
  0x11   :  { %348 = vmatpush.bf16.msra.mxu3 %v565_v16 }
  0x12   :  { %307 = vmatpush.bf16.msra.mxu0 %v540_v18  ;;  %378 = vperm.xlu0 %571, %v370_v26  }
  0x13   :  { %321 = vmatpush.bf16.msra.mxu1 %v548_v19 }
  0x14   :  { %335 = vmatpush.bf16.msra.mxu2 %v556_v20 }
  0x15   :  { %349 = vmatpush.bf16.msra.mxu3 %v564_v21 }
  0x16   :  { %308 = vmatpush.bf16.msra.mxu0 %v539_v22 }
  0x17   :  { %322 = vmatpush.bf16.msra.mxu1 %v547_v23 }
  0x18   :  { %336 = vmatpush.bf16.msra.mxu2 %v555_v24 }
  0x19   :  { %350 = vmatpush.bf16.msra.mxu3 %v563_v25 }
  0x1a   :  { %309 = vmatpush.bf16.msra.mxu0 %v538_v27 }
  0x1b   :  { %323 = vmatpush.bf16.msra.mxu1 %v546_v28 }
  0x1c   :  { %337 = vmatpush.bf16.msra.mxu2 %v554_v29 }
  0x1d   :  { %351 = vmatpush.bf16.msra.mxu3 %v562_v30 }
  0x1e   :  { %310 = vmatpush.bf16.msra.mxu0 %v537_v31 }
  0x1f   :  { %324 = vmatpush.bf16.msra.mxu1 %v545_v32 }
  0x20   :  { %338 = vmatpush.bf16.msra.mxu2 %v553_v33 }
  0x21   :  { %352 = vmatpush.bf16.msra.mxu3 %v561_v34  ;;  %311 = vmatmul.bf16.vlgmr.msra.gmra.mxu0 %v392_v43 }
  0x22   :  { %325 = vmatmul.bf16.vlgmr.msra.gmra.mxu1 %v396_v44 }
  0x23   :  { %339 = vmatmul.bf16.vlgmr.msra.gmra.mxu2 %v400_v45 }
  0x24   :  { %353 = vmatmul.bf16.vlgmr.msra.gmra.mxu3 %v404_v46 }
  0x7c   :  { %v374_v1 = vpop.permute.xlu0 %373 }
  0x84   :  { %v379_v5 = vpop.permute.xlu0 %378 }
  0x9e   :  { %v312_v48 = vpop.f32.mrf.mxu0 }
  0x9f   :  { %v326_v49 = vpop.f32.mrf.mxu1 }
  0xa0   :  { %v327_v50 = vadd.f32 %v326_v49, %v312_v48 }
  0xa6   :  { %v340_v51 = vpop.f32.mrf.mxu2  ;;  %v314_v56 = vpop.f32.mrf.mxu0 }
  0xa7   :  { %v354_v52 = vpop.f32.mrf.mxu3  ;;  %v341_v53 = vadd.f32 %v340_v51, %v327_v50  ;;  %v328_v57 = vpop.f32.mrf.mxu1 }
  0xa8   :  { %v329_v59 = vadd.f32 %v328_v57, %v314_v56 }
  0xa9   :  { %v355_v55 = vadd.f32 %v354_v52, %v341_v53 }
  0xab   :  { %v359_v58 = vadd.f32 %v355_v55, %v21_v54 }
  0xad   :  { %362 = vst.msk [vmem:[#allocation2] sm:$0xff] %vm18_vm0, %v359_v58 }
  0xae   :  { %v342_v60 = vpop.f32.mrf.mxu2 }
  0xaf   :  { %v343_v61 = vadd.f32 %v342_v60, %v329_v59  ;;  %v356_v63 = vpop.f32.mrf.mxu3 }
  0xb1   :  { %v357_v0 = vadd.f32 %v356_v63, %v343_v61 }
  0xb3   :  { %v360_v2 = vadd.f32 %v357_v0, %v22_v62 }
  0xb4   :  { %v367_v3 = vld [vmem:[#allocation2] sm:$0xff] }
  0xb5   :  { %v381_v4 = vadd.f32 %v374_v1, %v367_v3  ;;  %363 = vst.msk [vmem:[#allocation2 + $0x8] sm:$0xff] %vm18_vm0, %v360_v2 }
  0xb7   :  { %383 = vst.msk [vmem:[%s735_s3] sm:$0xff] %vm18_vm0, %v381_v4 }
  0xbc   :  { %v368_v6 = vld [vmem:[#allocation2 + $0x8] sm:$0xff] }
  0xbd   :  { %v382_v7 = vadd.f32 %v379_v5, %v368_v6 }
  0xbf   :  { %384 = vst.msk [vmem:[%s735_s3 + $0x8] sm:$0xff] %vm18_vm0, %v382_v7 }

// kernel: encoder_forward.2
= control target key start
LH: loop header
LB: loop body
LE: loop exit
PB: predicated region body
PF: predicated region fallthrough
CT: control target
= control target key end

     0   :  { %s1506_s18 = smov 0   ;;  %s1731_s0 = inlined_call_operand.vmem [shape: bf16[2,16,4], index: 0, kind: input, shape index: {}]   ;;  %s1732_s1 = inlined_call_operand.vmem [shape: bf16[4,32], index: 1, kind: input, shape index: {}]   ;;  %s1733_s2 = inlined_call_operand.vmem [shape: f32[1,32], index: 2, kind: input, shape index: {}]   ;;  %s1734_s3 = inlined_call_operand.vmem [shape: bf16[4,160,32], index: 3, kind: input, shape index: {}]   ;;  %s1735_s4 = inlined_call_operand.vmem [shape: f32[4,1,32], index: 4, kind: input, shape index: {}]   ;;  %s1736_s5 = inlined_call_operand.vmem [shape: bf16[2,32,16], index: 5, kind: output, shape index: {}]  }
   0x1 LB: > { %s1071_s19 = sadd.s32 4294967295, %s1470_s18   ;;  %p1075_p0 = scmp.ge.s32.totalorder %s1470_s18, 1  ;;  %s1470_s18 = sphi %s1506_s18, %s15_s18  }
   0x2   : > { %p187_p1 = scmp.lt.s32.totalorder %s1470_s18, 3 }
   0x4   : > { %p188_p2 = pnand %p1075_p0, %p187_p1 }
   0x5   : > { %p215_p3 = scmp.lt.s32.totalorder (!%p188_p2), %s1071_s19, 1  ;;  %s1473_s17 = smov (!%p188_p2), 96  }
   0x6   : > { %191 = sbr.rel (%p188_p2) target bundleno = 1519 (0x5ef), region = 40  ;;  %s1474_s20 = smov (!%p188_p2), 32  }
   0x7   : > { %s1475_s21 = smov (!%p188_p2), 64  }
   0xb   : > { %v231_v0 = vld [vmem:[%s1732_s1] sm:$0x3]  ;;  %vm245_vm0 = vcmask 1041408   ;;  %s1738_s19 = smov (!%p215_p3, %s1071_s19), 1  ;;  %vm241_vm1 = vcmask 31744   ;;  %vm226_vm2 = vcmask 261120  }
   0xc   : > { %v247_v1 = vsel %vm245_vm0, %v231_v0, 0  ;;  %s1324_s22 = sshll.u32 %s1738_s19, 3  ;;  %v1472_v3 = vmov 0.0   ;;  %v1336_v4 = vld [vmem:[%s1734_s3 + $0x48] sm:$0xff]  ;;  %v1335_v5 = vld [vmem:[%s1734_s3 + $0x40] sm:$0xff]  ;;  %v1334_v14 = vld [vmem:[%s1734_s3 + $0x38] sm:$0xff] }
   0xd   : > { %256 = vmatpush.bf16.msra.mxu0 %v247_v1  ;;  %s219_s25 = scalar_lea.vmem %s1731_s0, %s1324_s22  ;;  %228 = vst.msk [vmem:[#allocation2 + $0x18] sm:$0xff] %vm226_vm2, %v1472_v3  ;;  %428 = vmatpush.bf16.msra.mxu2 %v1336_v4  ;;  %v1439_v6 = vld [vmem:[%s1733_s2] ss:$0 sm:$0xff]  ;;  %v1333_v18 = vld [vmem:[%s1734_s3 + $0x30] sm:$0xff]  ;;  %v1332_v20 = vld [vmem:[%s1734_s3 + $0x28] sm:$0xff]  ;;  %vm334_vm5 = vcmask 523264  }
   0xe   : > { %v1326_v2 = vld [vmem:[%s219_s25] sm:$0xff]  ;;  %227 = vst.msk [vmem:[#allocation2] sm:$0xff] %vm226_vm2, %v1472_v3  ;;  %408 = vmatpush.bf16.msra.mxu1 %v1334_v14  ;;  %v1330_v25 = vld [vmem:[%s1734_s3 + $0x18] sm:$0xff]  ;;  %v1329_v38 = vld [vmem:[%s1734_s3 + $0x10] sm:$0xff]  ;;  %vm337_vm6 = vcmask 785408   ;;  %s1325_s8 = sshll.u32 %s1738_s19, 4 }
   0xf   : > { %v1331_v23 = vld [vmem:[%s1734_s3 + $0x20] sm:$0xff]  ;;  %v1328_v39 = vld [vmem:[%s1734_s3 + $0x8] sm:$0xff]  ;;  %v1346_v59 = vld [vmem:[%s1734_s3 + $0x98] sm:$0xff]  ;;  %s224_s11 = scalar_lea.vmem %s1736_s5, %s1325_s8  ;;  %vm1011_vm15 = vcmask 125952  }
  0x10   : > { %1084 = vmatmul.msk.bf16.vlgmr.msra.gmra.mxu0 %vm241_vm1, %v1326_v2  ;;  %v1327_v40 = vld [vmem:[%s1734_s3] sm:$0xff]  ;;  %v1345_v61 = vld [vmem:[%s1734_s3 + $0x90] sm:$0xff] }
  0x11   : > { %429 = vmatpush.bf16.msra.mxu2 %v1335_v5  ;;  %v1440_v60 = vld [vmem:[%s1735_s4] ss:$0 sm:$0xff]  ;;  %603 = vmatpush.bf16.msrb.mxu0 %v1346_v59 }
  0x12   : > { %409 = vmatpush.bf16.msra.mxu1 %v1333_v18 }
  0x15   : > { %604 = vmatpush.bf16.msrb.mxu0 %v1345_v61 }
  0x16   : > { %410 = vmatpush.bf16.msra.mxu1 %v1332_v20 }
  0x1a   : > { %411 = vmatpush.bf16.msra.mxu1 %v1331_v23 }
  0x1e   : > { %412 = vmatpush.bf16.msra.mxu1 %v1330_v25 }
  0x22   : > { %413 = vmatpush.bf16.msra.mxu1 %v1329_v38 }
  0x26   : > { %414 = vmatpush.bf16.msra.mxu1 %v1328_v39 }
  0x2a   : > { %415 = vmatpush.bf16.msra.mxu1 %v1327_v40 }
  0x8d   : > { %v258_v7 = vpop.f32.mrf.mxu0 }
  0x8e   : > { %v259_v8 = vadd.f32 %v1439_v6, %v258_v7 }
  0x90   : > { %v265_v9 = vmin.f32 %v259_v8, 0.0  ;;  %vm263_vm3 = vcmp.gt.f32.partialorder %v259_v8, 0.0 }
  0x92   : > { %v267_v10 = vmul.f32 1.442695, %v265_v9 }
  0x94   : > { %1444 = vpow2.f32 %v267_v10 }
  0x95   : > { %v260_v11 = vpop.f32.mrf.mxu0 }
  0x96   : > { %v261_v12 = vadd.f32 %v1439_v6, %v260_v11 }
  0x98   : > { %v266_v13 = vmin.f32 %v261_v12, 0.0  ;;  %vm264_vm4 = vcmp.gt.f32.partialorder %v261_v12, 0.0 }
  0x9a   : > { %v1445_v15 = vpop.eup %1444  ;;  %v269_v16 = vmul.f32 1.442695, %v266_v13 }
  0x9b   : > { %v1085_v17 = vadd.f32 -1.0, %v1445_v15 }
  0x9c   : > { %1446 = vpow2.f32 %v269_v16 }
  0x9d   : > { %v1540_v19 = vsel %vm263_vm3, %v259_v8, %v1085_v17 }
  0x9e   : > { %296 = vst.msk [vmem:[#allocation2 + $0x8] sm:$0xff] %vm226_vm2, %v1540_v19 }
  0xa2   : > { %v1447_v21 = vpop.eup %1446 }
  0xa3   : > { %v1086_v22 = vadd.f32 -1.0, %v1447_v21 }
  0xa5   : > { %v1550_v24 = vsel %vm264_vm4, %v261_v12, %v1086_v22  ;;  %v300_v31 = vld [vmem:[#allocation2 + $0x7] sm:$0xff] }
  0xa6   : > { %297 = vst.msk [vmem:[#allocation2 + $0x10] sm:$0xff] %vm226_vm2, %v1550_v24  ;;  %v302_v36 = vld [vmem:[#allocation2 + $0x8] sm:$0xff] }
  0xa7   : > { %v298_v46 = vld [vmem:[#allocation2 + $0x6] sm:$0xff] }
  0xad   : > { %v306_v26 = vld [vmem:[#allocation2 + $0xa] sm:$0xff]  ;;  %v307_v27 = vld [vmem:[#allocation2 + $0x12] sm:$0xff] }
  0xae   : > { %v304_v28 = vld [vmem:[#allocation2 + $0x9] sm:$0xff]  ;;  %v341_v29 = vpack.c.bf16 %v307_v27, %v306_v26  ;;  %v305_v30 = vld [vmem:[#allocation2 + $0x11] sm:$0xff] }
  0xaf   : > { %v301_v32 = vld [vmem:[#allocation2 + $0xf] sm:$0xff]  ;;  %v1389_v33 = vpack.i.bf16 %v305_v30, %v304_v28 }
  0xb0   : > { %v1379_v34 = vpack.i.bf16 %v301_v32, %v300_v31  ;;  %1127 = vmatmul.msk.bf16.vlgmr.msra.gmra.mxu2 %vm226_vm2, %v341_v29  ;;  %v303_v35 = vld [vmem:[#allocation2 + $0x10] sm:$0xff]  ;;  %v1344_v30 = vld [vmem:[%s1734_s3 + $0x88] sm:$0xff]  ;;  %v1343_v31 = vld [vmem:[%s1734_s3 + $0x80] sm:$0xff] }
  0xb1   : > { %1390 = vrot.lane.b32.xlu1 %v1389_v33, %s1473_s17  ;;  %v1384_v37 = vpack.i.bf16 %v303_v35, %v302_v36  ;;  %v299_v47 = vld [vmem:[#allocation2 + $0xe] sm:$0xff]  ;;  %583 = vmatpush.bf16.msra.mxu3 %v1344_v30  ;;  %v1342_v32 = vld [vmem:[%s1734_s3 + $0x78] sm:$0xff]  ;;  %v1339_v35 = vld [vmem:[%s1734_s3 + $0x60] sm:$0xff] }
  0xb2   : > { %1380 = vrot.lane.b32.xlu0 %v1379_v34, %s1474_s20  ;;  %v1341_v33 = vld [vmem:[%s1734_s3 + $0x70] sm:$0xff]  ;;  %v1340_v34 = vld [vmem:[%s1734_s3 + $0x68] sm:$0xff]  ;;  %v1338_v36 = vld [vmem:[%s1734_s3 + $0x58] sm:$0xff] }
  0xb3   : > { %v1351_v30 = vld [vmem:[%s1734_s3 + $0xc0] sm:$0xff] }
  0xb5   : > { %584 = vmatpush.bf16.msra.mxu3 %v1343_v31  ;;  %v1350_v31 = vld [vmem:[%s1734_s3 + $0xb8] sm:$0xff] }
  0xb9   : > { %585 = vmatpush.bf16.msra.mxu3 %v1342_v32  ;;  %v1349_v32 = vld [vmem:[%s1734_s3 + $0xb0] sm:$0xff] }
  0xba   : > { %1385 = vrot.lane.b32.xlu0 %v1384_v37, %s1475_s21  ;;  %v1337_v37 = vld [vmem:[%s1734_s3 + $0x50] sm:$0xff] }
  0xbd   : > { %586 = vmatpush.bf16.msra.mxu3 %v1341_v33  ;;  %v1348_v33 = vld [vmem:[%s1734_s3 + $0xa8] sm:$0xff] }
  0xc1   : > { %587 = vmatpush.bf16.msra.mxu3 %v1340_v34  ;;  %v1347_v34 = vld [vmem:[%s1734_s3 + $0xa0] sm:$0xff] }
  0xc5   : > { %588 = vmatpush.bf16.msra.mxu3 %v1339_v35 }
  0xc9   : > { %589 = vmatpush.bf16.msra.mxu3 %v1338_v36 }
  0xcd   : > { %590 = vmatpush.bf16.msra.mxu3 %v1337_v37 }
 0x123   : > { %v1391_v44 = vpop.permute.xlu1 %1390 }
 0x124   : > { %v1381_v41 = vpop.permute.xlu0 %1380  ;;  %v1393_v50 = vunpack.i.h.bf16 %v1391_v44  ;;  %v1392_v51 = vunpack.i.l.bf16 %v1391_v44 }
 0x125   : > { %v1383_v42 = vunpack.i.h.bf16 %v1381_v41  ;;  %v1382_v43 = vunpack.i.l.bf16 %v1381_v41 }
 0x127   : > { %v332_v52 = vsel %vm226_vm2, %v298_v46, %v1382_v43  ;;  %v333_v53 = vsel %vm226_vm2, %v299_v47, %v1383_v42 }
 0x12c   : > { %v1386_v45 = vpop.permute.xlu0 %1385 }
 0x12d   : > { %v1388_v48 = vunpack.i.h.bf16 %v1386_v45  ;;  %v1387_v49 = vunpack.i.l.bf16 %v1386_v45 }
 0x12f   : > { %v335_v54 = vsel %vm334_vm5, %v332_v52, %v1387_v49  ;;  %v336_v55 = vsel %vm334_vm5, %v333_v53, %v1388_v48 }
 0x130   : > { %v338_v56 = vsel %vm337_vm6, %v335_v54, %v1392_v51  ;;  %v339_v57 = vsel %vm337_vm6, %v336_v55, %v1393_v50 }
 0x131   : > { %v340_v58 = vpack.c.bf16 %v339_v57, %v338_v56  ;;  %v1441_v56 = vld [vmem:[%s1735_s4 + $0x1] ss:$0 sm:$0xff]  ;;  %v1356_v57 = vld [vmem:[%s1734_s3 + $0xe8] sm:$0xff] }
 0x132   : > { %778 = vmatpush.bf16.msra.mxu0 %v1356_v57 }
 0x133   : > { %416 = vmatmul.bf16.vlgmr.msra.gmra.mxu1 %v340_v58  ;;  %v431_v62 = vpop.f32.mrf.mxu2  ;;  %v1355_v58 = vld [vmem:[%s1734_s3 + $0xe0] sm:$0xff] }
 0x136   : > { %779 = vmatpush.bf16.msra.mxu0 %v1355_v58 }
 0x13b   : > { %v433_v6 = vpop.f32.mrf.mxu2 }
 0x1b0   : > { %v417_v63 = vpop.f32.mrf.mxu1 }
 0x1b1   : > { %v418_v0 = vadd.f32 %v1440_v60, %v417_v63 }
 0x1b3   : > { %v432_v1 = vadd.f32 %v431_v62, %v418_v0 }
 0x1b5   : > { %v440_v2 = vmin.f32 %v432_v1, 0.0  ;;  %vm438_vm7 = vcmp.gt.f32.partialorder %v432_v1, 0.0 }
 0x1b7   : > { %v442_v3 = vmul.f32 1.442695, %v440_v2 }
 0x1b8   : > { %v419_v4 = vpop.f32.mrf.mxu1 }
 0x1b9   : > { %1448 = vpow2.f32 %v442_v3  ;;  %v420_v5 = vadd.f32 %v1440_v60, %v419_v4 }
 0x1bb   : > { %v434_v7 = vadd.f32 %v433_v6, %v420_v5 }
 0x1bd   : > { %v441_v8 = vmin.f32 %v434_v7, 0.0  ;;  %vm439_vm8 = vcmp.gt.f32.partialorder %v434_v7, 0.0 }
 0x1bf   : > { %v1449_v9 = vpop.eup %1448  ;;  %v444_v10 = vmul.f32 1.442695, %v441_v8 }
 0x1c0   : > { %v1128_v11 = vadd.f32 -1.0, %v1449_v9 }
 0x1c1   : > { %1450 = vpow2.f32 %v444_v10 }
 0x1c2   : > { %v448_v12 = vsel %vm438_vm7, %v432_v1, %v1128_v11 }
 0x1c3   : > { %473 = vst.msk [vmem:[#allocation2 + $0x8] sm:$0xff] %vm226_vm2, %v448_v12 }
 0x1c7   : > { %v1451_v13 = vpop.eup %1450 }
 0x1c8   : > { %v1129_v14 = vadd.f32 -1.0, %v1451_v13 }
 0x1ca   : > { %v449_v15 = vsel %vm439_vm8, %v434_v7, %v1129_v14  ;;  %v479_v16 = vld [vmem:[#allocation2 + $0x8] sm:$0xff] }
 0x1cb   : > { %474 = vst.msk [vmem:[#allocation2 + $0x10] sm:$0xff] %vm226_vm2, %v449_v15  ;;  %v477_v23 = vld [vmem:[#allocation2 + $0x7] sm:$0xff] }
 0x1cc   : > { %v475_v45 = vld [vmem:[#allocation2 + $0x6] sm:$0xff] }
 0x1d2   : > { %v483_v17 = vld [vmem:[#allocation2 + $0xa] sm:$0xff]  ;;  %v484_v18 = vld [vmem:[#allocation2 + $0x12] sm:$0xff] }
 0x1d3   : > { %v480_v20 = vld [vmem:[#allocation2 + $0x10] sm:$0xff]  ;;  %v516_v21 = vpack.c.bf16 %v484_v18, %v483_v17 }
 0x1d4   : > { %v1399_v22 = vpack.i.bf16 %v480_v20, %v479_v16  ;;  %v478_v25 = vld [vmem:[#allocation2 + $0xf] sm:$0xff] }
 0x1d5   : > { %v1394_v26 = vpack.i.bf16 %v478_v25, %v477_v23  ;;  %1191 = vmatmul.msk.bf16.vlgmr.msrb.gmra.mxu0 %vm226_vm2, %v516_v21  ;;  %v481_v27 = vld [vmem:[#allocation2 + $0x9] sm:$0xff]  ;;  %v482_v28 = vld [vmem:[#allocation2 + $0x11] sm:$0xff] }
 0x1d6   : > { %1400 = vrot.lane.b32.xlu2 %v1399_v22, %s1475_s21  ;;  %v1404_v29 = vpack.i.bf16 %v482_v28, %v481_v27  ;;  %v476_v46 = vld [vmem:[#allocation2 + $0xe] sm:$0xff]  ;;  %v1354_v27 = vld [vmem:[%s1734_s3 + $0xd8] sm:$0xff] }
 0x1d7   : > { %1395 = vrot.lane.b32.xlu1 %v1394_v26, %s1474_s20  ;;  %758 = vmatpush.bf16.msrb.mxu2 %v1354_v27  ;;  %v1353_v28 = vld [vmem:[%s1734_s3 + $0xd0] sm:$0xff] }
 0x1d8   : > { %v1361_v27 = vld [vmem:[%s1734_s3 + $0x110] sm:$0xff] }
 0x1db   : > { %759 = vmatpush.bf16.msrb.mxu2 %v1353_v28  ;;  %v1360_v28 = vld [vmem:[%s1734_s3 + $0x108] sm:$0xff] }
 0x1de   : > { %1405 = vrot.lane.b32.xlu2 %v1404_v29, %s1473_s17  ;;  %v1352_v29 = vld [vmem:[%s1734_s3 + $0xc8] sm:$0xff] }
 0x1df   : > { %760 = vmatpush.bf16.msrb.mxu2 %v1352_v29  ;;  %v1359_v29 = vld [vmem:[%s1734_s3 + $0x100] sm:$0xff] }
 0x1e3   : > { %761 = vmatpush.bf16.msrb.mxu2 %v1351_v30  ;;  %v1358_v30 = vld [vmem:[%s1734_s3 + $0xf8] sm:$0xff] }
 0x1e7   : > { %762 = vmatpush.bf16.msrb.mxu2 %v1350_v31  ;;  %v1357_v31 = vld [vmem:[%s1734_s3 + $0xf0] sm:$0xff] }
 0x1eb   : > { %763 = vmatpush.bf16.msrb.mxu2 %v1349_v32 }
 0x1ef   : > { %764 = vmatpush.bf16.msrb.mxu2 %v1348_v33 }
 0x1f3   : > { %765 = vmatpush.bf16.msrb.mxu2 %v1347_v34 }
 0x230   : > { %v1401_v38 = vpop.permute.xlu2 %1400 }
 0x231   : > { %v1403_v43 = vunpack.i.h.bf16 %v1401_v38  ;;  %v1402_v44 = vunpack.i.l.bf16 %v1401_v38 }
 0x238   : > { %v1406_v39 = vpop.permute.xlu2 %1405 }
 0x239   : > { %v1408_v47 = vunpack.i.h.bf16 %v1406_v39  ;;  %v1407_v48 = vunpack.i.l.bf16 %v1406_v39 }
 0x249   : > { %v1396_v40 = vpop.permute.xlu1 %1395 }
 0x24a   : > { %v1398_v41 = vunpack.i.h.bf16 %v1396_v40  ;;  %v1397_v42 = vunpack.i.l.bf16 %v1396_v40 }
 0x24c   : > { %v509_v49 = vsel %vm226_vm2, %v475_v45, %v1397_v42  ;;  %v510_v50 = vsel %vm226_vm2, %v476_v46, %v1398_v41 }
 0x24d   : > { %v511_v51 = vsel %vm334_vm5, %v509_v49, %v1402_v44  ;;  %v512_v52 = vsel %vm334_vm5, %v510_v50, %v1403_v43 }
 0x24e   : > { %v513_v53 = vsel %vm337_vm6, %v511_v51, %v1407_v48  ;;  %v514_v54 = vsel %vm337_vm6, %v512_v52, %v1408_v47 }
 0x24f   : > { %v515_v55 = vpack.c.bf16 %v514_v54, %v513_v53  ;;  %v1366_v53 = vld [vmem:[%s1734_s3 + $0x138] sm:$0xff]  ;;  %v1442_v54 = vld [vmem:[%s1735_s4 + $0x2] ss:$0 sm:$0xff] }
 0x250   : > { %953 = vmatpush.bf16.msrb.mxu3 %v1366_v53 }
 0x251   : > { %591 = vmatmul.bf16.vlgmr.msra.gmra.mxu3 %v515_v55  ;;  %v1365_v55 = vld [vmem:[%s1734_s3 + $0x130] sm:$0xff] }
 0x252   : > { %v606_v59 = vpop.f32.mrf.mxu0 }
 0x254   : > { %954 = vmatpush.bf16.msrb.mxu3 %v1365_v55 }
 0x25a   : > { %v608_v4 = vpop.f32.mrf.mxu0 }
 0x2d4   : > { %v592_v60 = vpop.f32.mrf.mxu3 }
 0x2d5   : > { %v593_v61 = vadd.f32 %v1441_v56, %v592_v60 }
 0x2d7   : > { %v607_v62 = vadd.f32 %v606_v59, %v593_v61 }
 0x2d9   : > { %v611_v63 = vadd.f32 %v607_v62, %v1540_v19 }
 0x2db   : > { %v615_v0 = vmin.f32 %v611_v63, 0.0  ;;  %vm613_vm9 = vcmp.gt.f32.partialorder %v611_v63, 0.0 }
 0x2dc   : > { %v594_v1 = vpop.f32.mrf.mxu3 }
 0x2dd   : > { %v617_v2 = vmul.f32 1.442695, %v615_v0  ;;  %v595_v3 = vadd.f32 %v1441_v56, %v594_v1 }
 0x2df   : > { %1452 = vpow2.f32 %v617_v2  ;;  %v609_v5 = vadd.f32 %v608_v4, %v595_v3 }
 0x2e1   : > { %v612_v6 = vadd.f32 %v609_v5, %v1550_v24 }
 0x2e3   : > { %v616_v7 = vmin.f32 %v612_v6, 0.0  ;;  %vm614_vm10 = vcmp.gt.f32.partialorder %v612_v6, 0.0 }
 0x2e5   : > { %v1453_v8 = vpop.eup %1452  ;;  %v619_v9 = vmul.f32 1.442695, %v616_v7 }
 0x2e6   : > { %v1192_v10 = vadd.f32 -1.0, %v1453_v8 }
 0x2e7   : > { %1454 = vpow2.f32 %v619_v9 }
 0x2e8   : > { %v1632_v11 = vsel %vm613_vm9, %v611_v63, %v1192_v10 }
 0x2e9   : > { %648 = vst.msk [vmem:[#allocation2 + $0x8] sm:$0xff] %vm226_vm2, %v1632_v11 }
 0x2ed   : > { %v1455_v19 = vpop.eup %1454 }
 0x2ee   : > { %v1193_v12 = vadd.f32 -1.0, %v1455_v19 }
 0x2f0   : > { %v1636_v13 = vsel %vm614_vm10, %v612_v6, %v1193_v12  ;;  %v654_v24 = vld [vmem:[#allocation2 + $0x8] sm:$0xff] }
 0x2f1   : > { %649 = vst.msk [vmem:[#allocation2 + $0x10] sm:$0xff] %vm226_vm2, %v1636_v13  ;;  %v652_v14 = vld [vmem:[#allocation2 + $0x7] sm:$0xff] }
 0x2f2   : > { %v650_v42 = vld [vmem:[#allocation2 + $0x6] sm:$0xff] }
 0x2f8   : > { %v658_v15 = vld [vmem:[#allocation2 + $0xa] sm:$0xff]  ;;  %v659_v16 = vld [vmem:[#allocation2 + $0x12] sm:$0xff] }
 0x2f9   : > { %v656_v17 = vld [vmem:[#allocation2 + $0x9] sm:$0xff]  ;;  %v691_v18 = vpack.c.bf16 %v659_v16, %v658_v15  ;;  %v657_v20 = vld [vmem:[#allocation2 + $0x11] sm:$0xff] }
 0x2fa   : > { %v655_v21 = vld [vmem:[#allocation2 + $0x10] sm:$0xff]  ;;  %v1419_v23 = vpack.i.bf16 %v657_v20, %v656_v17 }
 0x2fb   : > { %v653_v22 = vld [vmem:[#allocation2 + $0xf] sm:$0xff]  ;;  %v1414_v25 = vpack.i.bf16 %v655_v21, %v654_v24  ;;  %1255 = vmatmul.msk.bf16.vlgmr.msra.gmra.mxu0 %vm226_vm2, %v691_v18 }
 0x2fc   : > { %v1409_v26 = vpack.i.bf16 %v653_v22, %v652_v14  ;;  %1420 = vrot.lane.b32.xlu2 %v1419_v23, %s1473_s17  ;;  %v651_v43 = vld [vmem:[#allocation2 + $0xe] sm:$0xff] }
 0x2fd   : > { %1415 = vrot.lane.b32.xlu1 %v1414_v25, %s1475_s21  ;;  %v1364_v23 = vld [vmem:[%s1734_s3 + $0x128] sm:$0xff]  ;;  %v1363_v25 = vld [vmem:[%s1734_s3 + $0x120] sm:$0xff] }
 0x2fe   : > { %1410 = vrot.lane.b32.xlu0 %v1409_v26, %s1474_s20  ;;  %933 = vmatpush.bf16.msrb.mxu1 %v1364_v23  ;;  %v1362_v26 = vld [vmem:[%s1734_s3 + $0x118] sm:$0xff] }
 0x302   : > { %934 = vmatpush.bf16.msrb.mxu1 %v1363_v25 }
 0x306   : > { %935 = vmatpush.bf16.msrb.mxu1 %v1362_v26 }
 0x30a   : > { %936 = vmatpush.bf16.msrb.mxu1 %v1361_v27 }
 0x30e   : > { %937 = vmatpush.bf16.msrb.mxu1 %v1360_v28 }
 0x312   : > { %938 = vmatpush.bf16.msrb.mxu1 %v1359_v29 }
 0x316   : > { %939 = vmatpush.bf16.msrb.mxu1 %v1358_v30 }
 0x31a   : > { %940 = vmatpush.bf16.msrb.mxu1 %v1357_v31 }
 0x356   : > { %v1421_v36 = vpop.permute.xlu2 %1420 }
 0x357   : > { %v1423_v44 = vunpack.i.h.bf16 %v1421_v36  ;;  %v1422_v45 = vunpack.i.l.bf16 %v1421_v36 }
 0x36f   : > { %v1416_v35 = vpop.permute.xlu1 %1415 }
 0x370   : > { %v1418_v37 = vunpack.i.h.bf16 %v1416_v35  ;;  %v1417_v38 = vunpack.i.l.bf16 %v1416_v35  ;;  %v1411_v39 = vpop.permute.xlu0 %1410 }
 0x371   : > { %v1413_v40 = vunpack.i.h.bf16 %v1411_v39  ;;  %v1412_v41 = vunpack.i.l.bf16 %v1411_v39 }
 0x373   : > { %v684_v46 = vsel %vm226_vm2, %v650_v42, %v1412_v41  ;;  %v685_v47 = vsel %vm226_vm2, %v651_v43, %v1413_v40 }
 0x374   : > { %v686_v48 = vsel %vm334_vm5, %v684_v46, %v1417_v38  ;;  %v687_v49 = vsel %vm334_vm5, %v685_v47, %v1418_v37 }
 0x375   : > { %v688_v50 = vsel %vm337_vm6, %v686_v48, %v1422_v45  ;;  %v689_v51 = vsel %vm337_vm6, %v687_v49, %v1423_v44 }
 0x376   : > { %v690_v52 = vpack.c.bf16 %v689_v51, %v688_v50  ;;  %v1443_v50 = vld [vmem:[%s1735_s4 + $0x3] ss:$0 sm:$0xff] }
 0x378   : > { %766 = vmatmul.bf16.vlgmr.msrb.gmra.mxu2 %v690_v52  ;;  %v781_v56 = vpop.f32.mrf.mxu0 }
 0x380   : > { %v783_v0 = vpop.f32.mrf.mxu0 }
 0x3fb   : > { %v767_v57 = vpop.f32.mrf.mxu2 }
 0x3fc   : > { %v768_v58 = vadd.f32 %v1442_v54, %v767_v57 }
 0x3fe   : > { %v782_v59 = vadd.f32 %v781_v56, %v768_v58 }
 0x400   : > { %v790_v60 = vmin.f32 %v782_v59, 0.0  ;;  %vm788_vm11 = vcmp.gt.f32.partialorder %v782_v59, 0.0 }
 0x402   : > { %v792_v61 = vmul.f32 1.442695, %v790_v60 }
 0x403   : > { %v769_v62 = vpop.f32.mrf.mxu2 }
 0x404   : > { %1456 = vpow2.f32 %v792_v61  ;;  %v770_v63 = vadd.f32 %v1442_v54, %v769_v62 }
 0x406   : > { %v784_v1 = vadd.f32 %v783_v0, %v770_v63 }
 0x408   : > { %v791_v2 = vmin.f32 %v784_v1, 0.0  ;;  %vm789_vm12 = vcmp.gt.f32.partialorder %v784_v1, 0.0 }
 0x40a   : > { %v1457_v3 = vpop.eup %1456  ;;  %v794_v4 = vmul.f32 1.442695, %v791_v2 }
 0x40b   : > { %v1256_v5 = vadd.f32 -1.0, %v1457_v3 }
 0x40c   : > { %1458 = vpow2.f32 %v794_v4 }
 0x40d   : > { %v798_v6 = vsel %vm788_vm11, %v782_v59, %v1256_v5 }
 0x40e   : > { %823 = vst.msk [vmem:[#allocation2 + $0x8] sm:$0xff] %vm226_vm2, %v798_v6 }
 0x412   : > { %v1459_v7 = vpop.eup %1458 }
 0x413   : > { %v1257_v8 = vadd.f32 -1.0, %v1459_v7 }
 0x415   : > { %v799_v9 = vsel %vm789_vm12, %v784_v1, %v1257_v8  ;;  %v829_v10 = vld [vmem:[#allocation2 + $0x8] sm:$0xff] }
 0x416   : > { %824 = vst.msk [vmem:[#allocation2 + $0x10] sm:$0xff] %vm226_vm2, %v799_v9  ;;  %v827_v19 = vld [vmem:[#allocation2 + $0x7] sm:$0xff] }
 0x417   : > { %v825_v39 = vld [vmem:[#allocation2 + $0x6] sm:$0xff] }
 0x41d   : > { %v833_v12 = vld [vmem:[#allocation2 + $0xa] sm:$0xff]  ;;  %v834_v24 = vld [vmem:[#allocation2 + $0x12] sm:$0xff] }
 0x41e   : > { %v831_v14 = vld [vmem:[#allocation2 + $0x9] sm:$0xff]  ;;  %v866_v15 = vpack.c.bf16 %v834_v24, %v833_v12  ;;  %v832_v16 = vld [vmem:[#allocation2 + $0x11] sm:$0xff] }
 0x41f   : > { %v830_v17 = vld [vmem:[#allocation2 + $0x10] sm:$0xff]  ;;  %v1434_v20 = vpack.i.bf16 %v832_v16, %v831_v14 }
 0x420   : > { %v828_v18 = vld [vmem:[#allocation2 + $0xf] sm:$0xff]  ;;  %v1429_v21 = vpack.i.bf16 %v830_v17, %v829_v10  ;;  %1319 = vmatmul.msk.bf16.vlgmr.msrb.gmra.mxu3 %vm226_vm2, %v866_v15 }
 0x421   : > { %v1424_v22 = vpack.i.bf16 %v828_v18, %v827_v19  ;;  %1435 = vrot.lane.b32.xlu2 %v1434_v20, %s1473_s17  ;;  %v826_v40 = vld [vmem:[#allocation2 + $0xe] sm:$0xff] }
 0x422   : > { %1430 = vrot.lane.b32.xlu1 %v1429_v21, %s1475_s21 }
 0x423   : > { %1425 = vrot.lane.b32.xlu0 %v1424_v22, %s1474_s20 }
 0x47b   : > { %v1436_v33 = vpop.permute.xlu2 %1435 }
 0x47c   : > { %v1438_v41 = vunpack.i.h.bf16 %v1436_v33  ;;  %v1437_v42 = vunpack.i.l.bf16 %v1436_v33 }
 0x494   : > { %v1431_v32 = vpop.permute.xlu1 %1430 }
 0x495   : > { %v1433_v34 = vunpack.i.h.bf16 %v1431_v32  ;;  %v1432_v35 = vunpack.i.l.bf16 %v1431_v32  ;;  %v1426_v36 = vpop.permute.xlu0 %1425 }
 0x496   : > { %v1428_v37 = vunpack.i.h.bf16 %v1426_v36  ;;  %v1427_v38 = vunpack.i.l.bf16 %v1426_v36 }
 0x498   : > { %v859_v43 = vsel %vm226_vm2, %v825_v39, %v1427_v38  ;;  %v860_v44 = vsel %vm226_vm2, %v826_v40, %v1428_v37 }
 0x499   : > { %v861_v45 = vsel %vm334_vm5, %v859_v43, %v1432_v35  ;;  %v862_v46 = vsel %vm334_vm5, %v860_v44, %v1433_v34 }
 0x49a   : > { %v863_v47 = vsel %vm337_vm6, %v861_v45, %v1437_v42  ;;  %v864_v48 = vsel %vm337_vm6, %v862_v46, %v1438_v41 }
 0x49b   : > { %v865_v49 = vpack.c.bf16 %v864_v48, %v863_v47 }
 0x49d   : > { %941 = vmatmul.bf16.vlgmr.msrb.gmra.mxu1 %v865_v49 }
 0x4a3   : > { %v956_v51 = vpop.f32.mrf.mxu3 }
 0x4ab   : > { %v958_v60 = vpop.f32.mrf.mxu3 }
 0x51a   : > { %v942_v52 = vpop.f32.mrf.mxu1 }
 0x51b   : > { %v943_v53 = vadd.f32 %v1443_v50, %v942_v52 }
 0x51d   : > { %v957_v54 = vadd.f32 %v956_v51, %v943_v53 }
 0x51f   : > { %v961_v55 = vadd.f32 %v957_v54, %v1632_v11 }
 0x521   : > { %v965_v56 = vmin.f32 %v961_v55, 0.0  ;;  %vm963_vm13 = vcmp.gt.f32.partialorder %v961_v55, 0.0 }
 0x522   : > { %v944_v57 = vpop.f32.mrf.mxu1 }
 0x523   : > { %v945_v58 = vadd.f32 %v1443_v50, %v944_v57  ;;  %v967_v59 = vmul.f32 1.442695, %v965_v56 }
 0x525   : > { %v959_v61 = vadd.f32 %v958_v60, %v945_v58  ;;  %1460 = vpow2.f32 %v967_v59 }
 0x527   : > { %v962_v62 = vadd.f32 %v959_v61, %v1636_v13 }
 0x529   : > { %v966_v63 = vmin.f32 %v962_v62, 0.0  ;;  %vm964_vm14 = vcmp.gt.f32.partialorder %v962_v62, 0.0 }
 0x52b   : > { %v1461_v0 = vpop.eup %1460  ;;  %v969_v1 = vmul.f32 1.442695, %v966_v63 }
 0x52c   : > { %v1320_v2 = vadd.f32 -1.0, %v1461_v0 }
 0x52d   : > { %1462 = vpow2.f32 %v969_v1 }
 0x52e   : > { %v973_v3 = vsel %vm963_vm13, %v961_v55, %v1320_v2 }
 0x52f   : > { %975 = vxpose.xlu0.b32.start [1/2] (short) (narrow) %v973_v3, 32 }
 0x533   : > { %v1463_v4 = vpop.eup %1462 }
 0x534   : > { %v1321_v11 = vadd.f32 -1.0, %v1463_v4 }
 0x536   : > { %v974_v5 = vsel %vm964_vm14, %v962_v62, %v1321_v11 }
 0x537   : > { %976 = vxpose.xlu0.b32.end [2/2] (short) (narrow) %v974_v5, 32 }
 0x5d3   : > { %v991_v13 = vpop.trf.xlu0 }
 0x5d4   : > { %v1007_v6 = vpack.c.bf16 %v991_v13, %v991_v13 }
 0x5d6   : > { %1012 = vst.msk [vmem:[%s224_s11] sm:$0xf] %vm1011_vm15, %v1007_v6 }
 0x5db   : > { %v992_v7 = vpop.trf.xlu0 }
 0x5dc   : > { %v1008_v8 = vpack.c.bf16 %v992_v7, %v992_v7 }
 0x5de   : > { %1013 = vst.msk [vmem:[%s224_s11 + $0x4] sm:$0xf] %vm1011_vm15, %v1008_v8 }
 0x5e3   : > { %v993_v9 = vpop.trf.xlu0 }
 0x5e4   : > { %v1009_v10 = vpack.c.bf16 %v993_v9, %v993_v9 }
 0x5e6   : > { %1014 = vst.msk [vmem:[%s224_s11 + $0x8] sm:$0xf] %vm1011_vm15, %v1009_v10 }
 0x5eb   : > { %v994_v19 = vpop.trf.xlu0 }
 0x5ec   : > { %v1010_v12 = vpack.c.bf16 %v994_v19, %v994_v19 }
 0x5ee   : > { %1015 = vst.msk [vmem:[%s224_s11 + $0xc] sm:$0xf] %vm1011_vm15, %v1010_v12 }
 0x5ef PF: > { %s15_s18 = sadd.s32 1, %s1470_s18  }
 0x5f0   : > { %p12_p4 = scmp.ge.s32.totalorder %s15_s18, 4  }
 0x5f2   :  { %14 = sbr.rel (!%p12_p4) target bundleno = 1 (0x1), region = 76 }

</bundles_post_ra>
